<compile_context>
chip_gen: v6e
topology: v6e:2x2x1
jax: 0.10.0
libtpu: 0.0.40
codegen_flags: <defaults>
</compile_context>

<pallas_src>
import math
import jax
import jax.numpy as jnp
from jax.experimental import pallas as pl
from jax.experimental.pallas import tpu as pltpu

LN_EPS = 1e-5  # torch.nn.LayerNorm default


# --------------------------------------------------------------------------
# Kernel
# --------------------------------------------------------------------------
def _make_kernel(real_h: int, batch: int):
    """real_h = true LayerNorm width (H); padded lanes are masked out exactly."""
    inv_h = 1.0 / float(real_h)

    def kernel(idx_ref, emb_ref, g_ref, w_ref, vec_ref, out_ref, e_buf, h_buf):
        s = pl.program_id(0)          # stage 0..2  (outer, sequential dependency)
        i = pl.program_id(1)          # G row tile  (inner)
        tm = g_ref.shape[0]
        P = h_buf.shape[1]

        # Seed e_prev with the padded, already-mxu-dtype embedding table once.
        @pl.when(jnp.logical_and(s == 0, i == 0))
        def _():
            e_buf[...] = emb_ref[...]

        # Once per stage: h = e_prev @ W_s + b_s for the whole graph (reused by
        # every row tile), plus a fresh gather accumulator for this stage.
        @pl.when(i == 0)
        def _():
            h = jnp.dot(e_buf[...], w_ref[0], preferred_element_type=jnp.float32)
            h = h + vec_ref[0, 0:1, :]                    # bias, f32
            h_buf[...] = h.astype(h_buf.dtype)
            out_ref[...] = jnp.zeros_like(out_ref)

        # Rows [i*tm, i*tm+tm) of LayerNorm(relu(G @ h)) — all f32 math.
        row0 = pl.multiple_of(i * tm, tm)
        gh = jnp.dot(g_ref[...], h_buf[...], preferred_element_type=jnp.float32)
        gh = jnp.maximum(gh, 0.0)                         # (tm, P); padded lanes are 0

        lane = jax.lax.broadcasted_iota(jnp.int32, (tm, P), 1)
        real = (lane < real_h).astype(jnp.float32)
        mu = jnp.sum(gh, axis=-1, keepdims=True) * inv_h  # padded lanes contribute 0
        d = (gh - mu) * real                              # mask padded lanes exactly
        var = jnp.sum(d * d, axis=-1, keepdims=True) * inv_h
        y = d * jax.lax.rsqrt(var + LN_EPS) * vec_ref[0, 1:2, :] + vec_ref[0, 2:3, :]
        # padded lanes: d = 0, ln_w = ln_b = 0  ->  stay exactly 0

        # Stage output rows become next stage's input.  h_buf already captured
        # everything needed from e_prev, so in-place overwrite is safe.
        e_buf[pl.ds(row0, tm), :] = y.astype(e_buf.dtype)

        # Fused `embed[idx, :]`: one-hot selector over this row tile (indices
        # are 1-based, read as scalars from SMEM), gathered with a small MXU
        # matmul and accumulated into the resident (batch, P) output block.
        col = jax.lax.broadcasted_iota(jnp.int32, (1, tm), 1) + row0
        sel = jnp.concatenate(
            [(col == (idx_ref[b] - 1)).astype(jnp.float32) for b in range(batch)],
            axis=0)                                       # (batch, tm)
        out_ref[...] += jnp.dot(sel, y, preferred_element_type=jnp.float32)

    return kernel


# --------------------------------------------------------------------------
# Wrapper
# --------------------------------------------------------------------------
def _round_up(x, m):
    return ((x + m - 1) // m) * m


def _vmem_budget_bytes():
    try:
        cap = int(pltpu.get_tpu_info().vmem_capacity_bytes)
    except Exception:
        cap = 64 * 1024 * 1024          # conservative fallback: v7x per-core VMEM
    return (cap * 3) // 4               # headroom for Mosaic internals / regalloc


def conv_embedding_3_forward(x_idx, embeddings, G, params, *,
                             mxu_dtype=jnp.bfloat16, tile_rows=None):
    """Full Conv_Embedding_3.forward (eval mode). x_idx are 1-based like PyTorch."""
    N, d_in = embeddings.shape
    H = params["w1"].shape[1]
    batch = int(x_idx.shape[0])

    P = _round_up(max(d_in, H, 1), 128)   # lane-dense padded feature width
    Np = _round_up(N, 8)                  # sublane-aligned node count
    isz = jnp.dtype(mxu_dtype).itemsize

    # ---- pack & pad the 15 original tensors into 4 dense slabs -------------
    emb_p = jnp.zeros((Np, P), mxu_dtype).at[:N, :d_in].set(embeddings.astype(mxu_dtype))
    g_p = jnp.zeros((Np, Np), mxu_dtype).at[:N, :N].set(G.astype(mxu_dtype))

    w_slab = jnp.zeros((3, P, P), mxu_dtype)
    w_slab = w_slab.at[0, :d_in, :H].set(params["w1"].astype(mxu_dtype))
    w_slab = w_slab.at[1, :H, :H].set(params["w2"].astype(mxu_dtype))
    w_slab = w_slab.at[2, :H, :H].set(params["w3"].astype(mxu_dtype))

    vec_slab = jnp.zeros((3, 8, P), jnp.float32)
    for s, (b, lw, lb) in enumerate([("b1", "ln1_w", "ln1_b"),
                                     ("b2", "ln2_w", "ln2_b"),
                                     ("b3", "ln3_w", "ln3_b")]):
        vec_slab = vec_slab.at[s, 0, :H].set(params[b].reshape(-1).astype(jnp.float32))
        vec_slab = vec_slab.at[s, 1, :H].set(params[lw].reshape(-1).astype(jnp.float32))
        vec_slab = vec_slab.at[s, 2, :H].set(params[lb].reshape(-1).astype(jnp.float32))

    idx = jnp.asarray(x_idx, jnp.int32).reshape(batch)   # 1-based; kernel does the -1

    # ---- choose the largest G row tile that fits the per-generation budget --
    budget = _vmem_budget_bytes()
    batch_al = _round_up(batch, 8)

    def vmem_need(tm):
        return (2 * tm * Np * isz          # G row tile, double buffered
                + 2 * P * P * isz          # per-stage weight block
                + 2 * 8 * P * 4            # per-stage bias/LN block
                + 2 * Np * P * isz         # padded embedding block
                + 2 * Np * P * isz         # e_buf + h_buf scratch
                + Np * P * 4               # f32 h temporary at stage entry
                + 2 * batch_al * P * 4     # resident output block
                + 8 * tm * P * 4           # f32 tile temporaries (gh, mask, d, y)
                + batch_al * tm * 4        # one-hot selector
                + (4 << 20))               # Mosaic internal scratch headroom

    if tile_rows is not None:
        tm = int(tile_rows)
        assert Np % tm == 0 and tm % 8 == 0, "tile_rows must divide padded N, mult of 8"
    else:
        tm = None
        for cand in (1024, 512, 256, 128, 64, 32, 16, 8):
            if Np % cand == 0 and vmem_need(cand) <= budget:
                tm = cand
                break
        assert tm is not None, (
            "TODO(synk): problem too large even at 8-row G tiles; "
            "would need additional tiling of the (N, P) activation buffers")
    n_tiles = Np // tm

    cost = pl.CostEstimate(
        flops=int(3 * (2 * Np * P * P + 2 * Np * Np * P + 2 * batch * Np * P)),
        transcendentals=int(3 * Np),
        bytes_accessed=int(emb_p.size * isz + 3 * g_p.size * isz
                           + w_slab.size * isz + vec_slab.size * 4
                           + batch * 3 * P * 4 + batch * 4),
    )
    cparams = pltpu.CompilerParams(
        dimension_semantics=("arbitrary", "arbitrary"),
        vmem_limit_bytes=int(budget),
    )

    out_pad = pl.pallas_call(
        _make_kernel(H, batch),
        out_shape=jax.ShapeDtypeStruct((batch, 3 * P), jnp.float32),
        grid=(3, n_tiles),
        in_specs=[
            pl.BlockSpec(memory_space=pltpu.MemorySpace.SMEM),     # idx (1-based)
            pl.BlockSpec((Np, P), lambda s, i: (0, 0)),            # embeddings (resident)
            pl.BlockSpec((tm, Np), lambda s, i: (i, 0)),           # G row tiles
            pl.BlockSpec((1, P, P), lambda s, i: (s, 0, 0)),       # W_s
            pl.BlockSpec((1, 8, P), lambda s, i: (s, 0, 0)),       # bias / ln_w / ln_b
        ],
        out_specs=pl.BlockSpec((batch, P), lambda s, i: (0, s)),
        scratch_shapes=[pltpu.VMEM((Np, P), mxu_dtype),            # e_buf (stage activations)
                        pltpu.VMEM((Np, P), mxu_dtype)],           # h_buf (e_prev @ W + b)
        compiler_params=cparams,
        cost_estimate=cost,
    )(idx, emb_p, g_p, w_slab, vec_slab)

    # Slice the lane-dense padded output back to torch.cat((e1, e2, e3), 1)[idx, :].
    out = out_pad.reshape(batch, 3, P)[:, :, :H].reshape(batch, 3 * H)
    recon_loss = jnp.zeros((1,), jnp.float32)
    return out, recon_loss


# --------------------------------------------------------------------------
# Params / reference
# --------------------------------------------------------------------------
def init_params(key, input_dim, out_dim):
    """Deterministic init mirroring Conv_layer.reset_parameters + LayerNorm defaults."""
    H = out_dim  # hidden_dim = out_dim in Conv_Embedding_3.__init__
    ks = jax.random.split(key, 6)
    stdv1 = 1.0 / math.sqrt(H)
    stdv2 = 1.0 / math.sqrt(H)
    stdv3 = 1.0 / math.sqrt(out_dim)
    return {
        "w1": jax.random.uniform(ks[0], (input_dim, H), jnp.float32, -stdv1, stdv1),
        "b1": jax.random.uniform(ks[1], (1, H), jnp.float32, -stdv1, stdv1),
        "w2": jax.random.uniform(ks[2], (H, H), jnp.float32, -stdv2, stdv2),
        "b2": jax.random.uniform(ks[3], (1, H), jnp.float32, -stdv2, stdv2),
        "w3": jax.random.uniform(ks[4], (H, out_dim), jnp.float32, -stdv3, stdv3),
        "b3": jax.random.uniform(ks[5], (1, out_dim), jnp.float32, -stdv3, stdv3),
        "ln1_w": jnp.ones((1, H), jnp.float32),  "ln1_b": jnp.zeros((1, H), jnp.float32),
        "ln2_w": jnp.ones((1, H), jnp.float32),  "ln2_b": jnp.zeros((1, H), jnp.float32),
        "ln3_w": jnp.ones((1, out_dim), jnp.float32), "ln3_b": jnp.zeros((1, out_dim), jnp.float32),
    }


def _reference_forward(x_idx, embeddings, G, params):
    """Pure-JAX reference mirroring the PyTorch module (eval mode), full f32."""
    hi = jax.lax.Precision.HIGHEST

    def stage(x, w, b, lw, lb):
        h = jnp.dot(x, w, precision=hi) + b
        h = jnp.maximum(jnp.dot(G, h, precision=hi), 0.0)
        mu = jnp.mean(h, axis=-1, keepdims=True)
        var = jnp.mean((h - mu) ** 2, axis=-1, keepdims=True)
        return (h - mu) * jax.lax.rsqrt(var + LN_EPS) * lw + lb

    e1 = stage(embeddings, params["w1"], params["b1"], params["ln1_w"], params["ln1_b"])
    e2 = stage(e1, params["w2"], params["b2"], params["ln2_w"], params["ln2_b"])
    e3 = stage(e2, params["w3"], params["b3"], params["ln3_w"], params["ln3_b"])
    return jnp.concatenate((e1, e2, e3), axis=1)[x_idx - 1, :]


# --------------------------------------------------------------------------
# Self-test
# --------------------------------------------------------------------------
if __name__ == "__main__":
    key = jax.random.PRNGKey(0)
    k_emb, k_g, k_param, k_idx = jax.random.split(key, 4)

    N = 64          # number of nodes in the embedding table / filter matrix
    input_dim = 16  # input feature dim
    out_dim = 32    # out_dim (== hidden_dim)
    batch = 8       # number of indices in x

    embeddings = jax.random.normal(k_emb, (N, input_dim), jnp.float32)
    G_raw = jax.random.uniform(k_g, (N, N), jnp.float32)
    G = G_raw / jnp.sum(G_raw, axis=1, keepdims=True)   # row-normalized dense "filter"
    params = init_params(k_param, input_dim, out_dim)
    x = jax.random.randint(k_idx, (batch,), 1, N + 1)   # 1-based indices like PyTorch

    ref = _reference_forward(x, embeddings, G, params)

    # Exact-parity path: f32 MXU, single row tile.
    out_f32, recon = conv_embedding_3_forward(x, embeddings, G, params,
                                              mxu_dtype=jnp.float32)
    jax.block_until_ready(out_f32)
    jax.block_until_ready(recon)
    assert out_f32.shape == (batch, 3 * out_dim), out_f32.shape
    assert recon.shape == (1,)
    assert jnp.allclose(out_f32, ref, rtol=1e-4, atol=1e-4), \
        float(jnp.max(jnp.abs(out_f32 - ref)))

    # Multi-row-tile path (exercises the G row-tile grid + gather accumulation).
    out_tiled, _ = conv_embedding_3_forward(x, embeddings, G, params,
                                            mxu_dtype=jnp.float32, tile_rows=16)
    jax.block_until_ready(out_tiled)
    assert jnp.allclose(out_tiled, ref, rtol=1e-4, atol=1e-4), \
        float(jnp.max(jnp.abs(out_tiled - ref)))

    # Default fast path: bf16 MXU, f32 LayerNorm/accumulation (smoke check).
    out_bf16, _ = conv_embedding_3_forward(x, embeddings, G, params)
    jax.block_until_ready(out_bf16)
    assert jnp.allclose(out_bf16, ref, rtol=1e-1, atol=1e-1), \
        float(jnp.max(jnp.abs(out_bf16 - ref)))

    print("KERNEL_OK")
</pallas_src>

<mosaic_0001>
module attributes {stable_mosaic.version = 11 : i64} {
  func.func @kernel(%arg0: i32, %arg1: i32, %arg2: memref<8xi32, #tpu.memory_space<smem>>, %arg3: memref<64x128xf32, #tpu.memory_space<vmem>>, %arg4: memref<64x64xf32, #tpu.memory_space<vmem>>, %arg5: memref<1x128x128xf32, #tpu.memory_space<vmem>>, %arg6: memref<1x8x128xf32, #tpu.memory_space<vmem>>, %arg7: memref<8x128xf32, #tpu.memory_space<vmem>>, %arg8: memref<64x128xf32, #tpu.memory_space<vmem>>, %arg9: memref<64x128xf32, #tpu.memory_space<vmem>>) attributes {dimension_semantics = [#tpu.dimension_semantics<arbitrary>, #tpu.dimension_semantics<arbitrary>], iteration_bounds = array<i64: 3, 1>, scalar_prefetch = 0 : i64, scratch_operands = 2 : i64, tpu.core_type = #tpu.core_type<tc>, window_params = [{transform_indices = @transform_0, window_bounds = array<i64: 8>}, {pipeline_mode = #tpu.pipeline_mode<synchronous>, transform_indices = @transform_1, window_bounds = array<i64: 64, 128>}, {transform_indices = @transform_2, window_bounds = array<i64: 64, 64>}, {transform_indices = @transform_3, window_bounds = array<i64: 1, 128, 128>}, {transform_indices = @transform_4, window_bounds = array<i64: 1, 8, 128>}, {transform_indices = @transform_5, window_bounds = array<i64: 8, 128>}]} {
    %c0_i32 = arith.constant 0 : i32
    %0 = arith.cmpi eq, %arg0, %c0_i32 : i32
    %c0_i32_0 = arith.constant 0 : i32
    %1 = arith.cmpi eq, %arg1, %c0_i32_0 : i32
    %2 = arith.andi %0, %1 : i1
    %3 = arith.extui %2 : i1 to i32
    %c0_i32_1 = arith.constant 0 : i32
    %4 = arith.cmpi ne, %3, %c0_i32_1 : i32
    scf.if %4 {
      %c0_33 = arith.constant 0 : index
      %c0_34 = arith.constant 0 : index
      %103 = vector.load %arg3[%c0_33, %c0_34] : memref<64x128xf32, #tpu.memory_space<vmem>>, vector<64x128xf32>
      %c0_35 = arith.constant 0 : index
      %c0_36 = arith.constant 0 : index
      %104 = vector.load %arg8[%c0_35, %c0_36] : memref<64x128xf32, #tpu.memory_space<vmem>>, vector<64x128xf32>
      tpu.vector_store %arg8[%c0_35, %c0_36], %103 {strides = array<i32>} : memref<64x128xf32, #tpu.memory_space<vmem>>, vector<64x128xf32>,
    } else {
    }
    %c0_i32_2 = arith.constant 0 : i32
    %5 = arith.cmpi eq, %arg1, %c0_i32_2 : i32
    %6 = arith.extui %5 : i1 to i32
    %c0_i32_3 = arith.constant 0 : i32
    %7 = arith.cmpi ne, %6, %c0_i32_3 : i32
    scf.if %7 {
      %c0_33 = arith.constant 0 : index
      %c0_34 = arith.constant 0 : index
      %103 = vector.load %arg8[%c0_33, %c0_34] : memref<64x128xf32, #tpu.memory_space<vmem>>, vector<64x128xf32>
      %c0_35 = arith.constant 0 : index
      %c0_36 = arith.constant 0 : index
      %c0_37 = arith.constant 0 : index
      %104 = vector.load %arg5[%c0_35, %c0_36, %c0_37] : memref<1x128x128xf32, #tpu.memory_space<vmem>>, vector<1x128x128xf32>
      %105 = vector.shape_cast %104 : vector<1x128x128xf32> to vector<128x128xf32>
      %cst_38 = arith.constant dense<0.000000e+00> : vector<64x128xf32>
      %106 = tpu.matmul %103, %105, %cst_38 {dimension_numbers = #tpu.dot_dimension_numbers<[1], [0], [0], [1], [0, 0, 1, 1], [], []>} : vector<64x128xf32>, vector<128x128xf32>, vector<64x128xf32> -> vector<64x128xf32>
      %c0_39 = arith.constant 0 : index
      %c0_40 = arith.constant 0 : index
      %c0_41 = arith.constant 0 : index
      %107 = vector.load %arg6[%c0_39, %c0_40, %c0_41] : memref<1x8x128xf32, #tpu.memory_space<vmem>>, vector<1x1x128xf32>
      %108 = vector.shape_cast %107 : vector<1x1x128xf32> to vector<1x128xf32>
      %109 = vector.broadcast %108 : vector<1x128xf32> to vector<64x128xf32>
      %110 = arith.addf %106, %109 : vector<64x128xf32>
      %c0_42 = arith.constant 0 : index
      %c0_43 = arith.constant 0 : index
      %111 = vector.load %arg9[%c0_42, %c0_43] : memref<64x128xf32, #tpu.memory_space<vmem>>, vector<64x128xf32>
      tpu.vector_store %arg9[%c0_42, %c0_43], %110 {strides = array<i32>} : memref<64x128xf32, #tpu.memory_space<vmem>>, vector<64x128xf32>,
      %cst_44 = arith.constant 0.000000e+00 : f32
      %112 = vector.broadcast %cst_44 : f32 to vector<8x128xf32>
      %c0_45 = arith.constant 0 : index
      %c0_46 = arith.constant 0 : index
      %113 = vector.load %arg7[%c0_45, %c0_46] : memref<8x128xf32, #tpu.memory_space<vmem>>, vector<8x128xf32>
      tpu.vector_store %arg7[%c0_45, %c0_46], %112 {strides = array<i32>} : memref<8x128xf32, #tpu.memory_space<vmem>>, vector<8x128xf32>,
    } else {
    }
    %c64_i32 = arith.constant 64 : i32
    %8 = arith.muli %arg1, %c64_i32 : i32
    %9 = tpu.assume_multiple %8, 64 : i32
    %c0 = arith.constant 0 : index
    %c0_4 = arith.constant 0 : index
    %10 = vector.load %arg4[%c0, %c0_4] : memref<64x64xf32, #tpu.memory_space<vmem>>, vector<64x64xf32>
    %c0_5 = arith.constant 0 : index
    %c0_6 = arith.constant 0 : index
    %11 = vector.load %arg9[%c0_5, %c0_6] : memref<64x128xf32, #tpu.memory_space<vmem>>, vector<64x128xf32>
    %cst = arith.constant dense<0.000000e+00> : vector<64x128xf32>
    %12 = tpu.matmul %10, %11, %cst {dimension_numbers = #tpu.dot_dimension_numbers<[1], [0], [0], [1], [0, 0, 1, 1], [], []>} : vector<64x64xf32>, vector<64x128xf32>, vector<64x128xf32> -> vector<64x128xf32>
    %cst_7 = arith.constant 0.000000e+00 : f32
    %13 = vector.broadcast %cst_7 : f32 to vector<64x128xf32>
    %14 = arith.maximumf %12, %13 : vector<64x128xf32>
    %15 = tpu.iota {dimensions = array<i32: 1>} : vector<64x128xi32>
    %c32_i32 = arith.constant 32 : i32
    %16 = vector.broadcast %c32_i32 : i32 to vector<64x128xi32>
    %17 = arith.cmpi slt, %15, %16 : vector<64x128xi32>
    %18 = arith.extui %17 : vector<64x128xi1> to vector<64x128xi32>
    %19 = arith.sitofp %18 : vector<64x128xi32> to vector<64x128xf32>
    %cst_8 = arith.constant dense<0.000000e+00> : vector<64xf32>
    %20 = vector.multi_reduction <add>, %14, %cst_8 [1] : vector<64x128xf32> to vector<64xf32>
    %21 = vector.shape_cast %20 : vector<64xf32> to vector<64x1xf32>
    %cst_9 = arith.constant 3.125000e-02 : f32
    %22 = vector.broadcast %cst_9 : f32 to vector<64x1xf32>
    %23 = arith.mulf %21, %22 : vector<64x1xf32>
    %24 = vector.broadcast %23 : vector<64x1xf32> to vector<64x128xf32>
    %25 = arith.subf %14, %24 : vector<64x128xf32>
    %26 = arith.mulf %25, %19 : vector<64x128xf32>
    %27 = arith.mulf %26, %26 : vector<64x128xf32>
    %cst_10 = arith.constant dense<0.000000e+00> : vector<64xf32>
    %28 = vector.multi_reduction <add>, %27, %cst_10 [1] : vector<64x128xf32> to vector<64xf32>
    %29 = vector.shape_cast %28 : vector<64xf32> to vector<64x1xf32>
    %cst_11 = arith.constant 3.125000e-02 : f32
    %30 = vector.broadcast %cst_11 : f32 to vector<64x1xf32>
    %31 = arith.mulf %29, %30 : vector<64x1xf32>
    %cst_12 = arith.constant 9.99999974E-6 : f32
    %32 = vector.broadcast %cst_12 : f32 to vector<64x1xf32>
    %33 = arith.addf %31, %32 : vector<64x1xf32>
    %34 = math.rsqrt %33 : vector<64x1xf32>
    %35 = vector.broadcast %34 : vector<64x1xf32> to vector<64x128xf32>
    %36 = arith.mulf %26, %35 : vector<64x128xf32>
    %c0_13 = arith.constant 0 : index
    %c1 = arith.constant 1 : index
    %c0_14 = arith.constant 0 : index
    %37 = vector.load %arg6[%c0_13, %c1, %c0_14] : memref<1x8x128xf32, #tpu.memory_space<vmem>>, vector<1x1x128xf32>
    %38 = vector.shape_cast %37 : vector<1x1x128xf32> to vector<1x128xf32>
    %39 = vector.broadcast %38 : vector<1x128xf32> to vector<64x128xf32>
    %40 = arith.mulf %36, %39 : vector<64x128xf32>
    %c0_15 = arith.constant 0 : index
    %c2 = arith.constant 2 : index
    %c0_16 = arith.constant 0 : index
    %41 = vector.load %arg6[%c0_15, %c2, %c0_16] : memref<1x8x128xf32, #tpu.memory_space<vmem>>, vector<1x1x128xf32>
    %42 = vector.shape_cast %41 : vector<1x1x128xf32> to vector<1x128xf32>
    %43 = vector.broadcast %42 : vector<1x128xf32> to vector<64x128xf32>
    %44 = arith.addf %40, %43 : vector<64x128xf32>
    %45 = arith.index_cast %9 : i32 to index
    %c0_17 = arith.constant 0 : index
    %46 = vector.load %arg8[%45, %c0_17] : memref<64x128xf32, #tpu.memory_space<vmem>>, vector<64x128xf32>
    tpu.vector_store %arg8[%45, %c0_17], %44 {strides = array<i32>} : memref<64x128xf32, #tpu.memory_space<vmem>>, vector<64x128xf32>,
    %47 = tpu.iota {dimensions = array<i32: 1>} : vector<1x64xi32>
    %48 = vector.broadcast %9 : i32 to vector<1x64xi32>
    %49 = arith.addi %47, %48 : vector<1x64xi32>
    %c0_18 = arith.constant 0 : index
    %50 = memref.load %arg2[%c0_18] : memref<8xi32, #tpu.memory_space<smem>>
    %c1_i32 = arith.constant 1 : i32
    %51 = arith.subi %50, %c1_i32 : i32
    %52 = vector.broadcast %51 : i32 to vector<1x64xi32>
    %53 = arith.cmpi eq, %49, %52 : vector<1x64xi32>
    %54 = arith.extui %53 : vector<1x64xi1> to vector<1x64xi32>
    %55 = arith.sitofp %54 : vector<1x64xi32> to vector<1x64xf32>
    %c1_19 = arith.constant 1 : index
    %56 = memref.load %arg2[%c1_19] : memref<8xi32, #tpu.memory_space<smem>>
    %c1_i32_20 = arith.constant 1 : i32
    %57 = arith.subi %56, %c1_i32_20 : i32
    %58 = vector.broadcast %57 : i32 to vector<1x64xi32>
    %59 = arith.cmpi eq, %49, %58 : vector<1x64xi32>
    %60 = arith.extui %59 : vector<1x64xi1> to vector<1x64xi32>
    %61 = arith.sitofp %60 : vector<1x64xi32> to vector<1x64xf32>
    %c2_21 = arith.constant 2 : index
    %62 = memref.load %arg2[%c2_21] : memref<8xi32, #tpu.memory_space<smem>>
    %c1_i32_22 = arith.constant 1 : i32
    %63 = arith.subi %62, %c1_i32_22 : i32
    %64 = vector.broadcast %63 : i32 to vector<1x64xi32>
    %65 = arith.cmpi eq, %49, %64 : vector<1x64xi32>
    %66 = arith.extui %65 : vector<1x64xi1> to vector<1x64xi32>
    %67 = arith.sitofp %66 : vector<1x64xi32> to vector<1x64xf32>
    %c3 = arith.constant 3 : index
    %68 = memref.load %arg2[%c3] : memref<8xi32, #tpu.memory_space<smem>>
    %c1_i32_23 = arith.constant 1 : i32
    %69 = arith.subi %68, %c1_i32_23 : i32
    %70 = vector.broadcast %69 : i32 to vector<1x64xi32>
    %71 = arith.cmpi eq, %49, %70 : vector<1x64xi32>
    %72 = arith.extui %71 : vector<1x64xi1> to vector<1x64xi32>
    %73 = arith.sitofp %72 : vector<1x64xi32> to vector<1x64xf32>
    %c4 = arith.constant 4 : index
    %74 = memref.load %arg2[%c4] : memref<8xi32, #tpu.memory_space<smem>>
    %c1_i32_24 = arith.constant 1 : i32
    %75 = arith.subi %74, %c1_i32_24 : i32
    %76 = vector.broadcast %75 : i32 to vector<1x64xi32>
    %77 = arith.cmpi eq, %49, %76 : vector<1x64xi32>
    %78 = arith.extui %77 : vector<1x64xi1> to vector<1x64xi32>
    %79 = arith.sitofp %78 : vector<1x64xi32> to vector<1x64xf32>
    %c5 = arith.constant 5 : index
    %80 = memref.load %arg2[%c5] : memref<8xi32, #tpu.memory_space<smem>>
    %c1_i32_25 = arith.constant 1 : i32
    %81 = arith.subi %80, %c1_i32_25 : i32
    %82 = vector.broadcast %81 : i32 to vector<1x64xi32>
    %83 = arith.cmpi eq, %49, %82 : vector<1x64xi32>
    %84 = arith.extui %83 : vector<1x64xi1> to vector<1x64xi32>
    %85 = arith.sitofp %84 : vector<1x64xi32> to vector<1x64xf32>
    %c6 = arith.constant 6 : index
    %86 = memref.load %arg2[%c6] : memref<8xi32, #tpu.memory_space<smem>>
    %c1_i32_26 = arith.constant 1 : i32
    %87 = arith.subi %86, %c1_i32_26 : i32
    %88 = vector.broadcast %87 : i32 to vector<1x64xi32>
    %89 = arith.cmpi eq, %49, %88 : vector<1x64xi32>
    %90 = arith.extui %89 : vector<1x64xi1> to vector<1x64xi32>
    %91 = arith.sitofp %90 : vector<1x64xi32> to vector<1x64xf32>
    %c7 = arith.constant 7 : index
    %92 = memref.load %arg2[%c7] : memref<8xi32, #tpu.memory_space<smem>>
    %c1_i32_27 = arith.constant 1 : i32
    %93 = arith.subi %92, %c1_i32_27 : i32
    %94 = vector.broadcast %93 : i32 to vector<1x64xi32>
    %95 = arith.cmpi eq, %49, %94 : vector<1x64xi32>
    %96 = arith.extui %95 : vector<1x64xi1> to vector<1x64xi32>
    %97 = arith.sitofp %96 : vector<1x64xi32> to vector<1x64xf32>
    %98 = tpu.concatenate %55, %61, %67, %73, %79, %85, %91, %97 in 0 : vector<1x64xf32>, vector<1x64xf32>, vector<1x64xf32>, vector<1x64xf32>, vector<1x64xf32>, vector<1x64xf32>, vector<1x64xf32>, vector<1x64xf32> -> vector<8x64xf32>
    %c0_28 = arith.constant 0 : index
    %c0_29 = arith.constant 0 : index
    %99 = vector.load %arg7[%c0_28, %c0_29] : memref<8x128xf32, #tpu.memory_space<vmem>>, vector<8x128xf32>
    %cst_30 = arith.constant dense<0.000000e+00> : vector<8x128xf32>
    %100 = tpu.matmul %98, %44, %cst_30 {dimension_numbers = #tpu.dot_dimension_numbers<[1], [0], [0], [1], [0, 0, 1, 1], [], []>} : vector<8x64xf32>, vector<64x128xf32>, vector<8x128xf32> -> vector<8x128xf32>
    %101 = arith.addf %99, %100 : vector<8x128xf32>
    %c0_31 = arith.constant 0 : index
    %c0_32 = arith.constant 0 : index
    %102 = vector.load %arg7[%c0_31, %c0_32] : memref<8x128xf32, #tpu.memory_space<vmem>>, vector<8x128xf32>
    tpu.vector_store %arg7[%c0_31, %c0_32], %101 {strides = array<i32>} : memref<8x128xf32, #tpu.memory_space<vmem>>, vector<8x128xf32>,
    return
  }
  func.func @transform_0(%arg0: i32, %arg1: i32) -> i32 {
    %c0_i32 = arith.constant 0 : i32
    %c0_i32_0 = arith.constant 0 : i32
    return %c0_i32 : i32
  }
  func.func @transform_1(%arg0: i32, %arg1: i32) -> (i32, i32) {
    %c0_i32 = arith.constant 0 : i32
    %c0_i32_0 = arith.constant 0 : i32
    %c0_i32_1 = arith.constant 0 : i32
    return %c0_i32, %c0_i32_0 : i32, i32
  }
  func.func @transform_2(%arg0: i32, %arg1: i32) -> (i32, i32) {
    %c0_i32 = arith.constant 0 : i32
    %c0_i32_0 = arith.constant 0 : i32
    return %arg1, %c0_i32 : i32, i32
  }
  func.func @transform_3(%arg0: i32, %arg1: i32) -> (i32, i32, i32) {
    %c0_i32 = arith.constant 0 : i32
    %c0_i32_0 = arith.constant 0 : i32
    %c0_i32_1 = arith.constant 0 : i32
    return %arg0, %c0_i32, %c0_i32_0 : i32, i32, i32
  }
  func.func @transform_4(%arg0: i32, %arg1: i32) -> (i32, i32, i32) {
    %c0_i32 = arith.constant 0 : i32
    %c0_i32_0 = arith.constant 0 : i32
    %c0_i32_1 = arith.constant 0 : i32
    return %arg0, %c0_i32, %c0_i32_0 : i32, i32, i32
  }
  func.func @transform_5(%arg0: i32, %arg1: i32) -> (i32, i32) {
    %c0_i32 = arith.constant 0 : i32
    %c0_i32_0 = arith.constant 0 : i32
    return %c0_i32, %arg0 : i32, i32
  }
}

</mosaic_0001>

<bundles_post_ra>
// kernel: tpu_custom_call.1
= control target key start
LH: loop header
LB: loop body
LE: loop exit
PB: predicated region body
PF: predicated region fallthrough
CT: control target
= control target key end

     0   :  { %s2034_s0 = inlined_call_operand.hbm [shape: s32[8], index: 0, kind: input, shape index: {}]   ;;  %s2035_s1 = inlined_call_operand.hbm [shape: f32[64,128], index: 1, kind: input, shape index: {}]   ;;  %s2036_s2 = inlined_call_operand.hbm [shape: f32[64,64], index: 2, kind: input, shape index: {}]   ;;  %s2037_s3 = inlined_call_operand.hbm [shape: f32[3,128,128], index: 3, kind: input, shape index: {}]   ;;  %s2038_s4 = inlined_call_operand.hbm [shape: f32[3,8,128], index: 4, kind: input, shape index: {}]   ;;  %s2039_s5 = inlined_call_operand.hbm [shape: f32[8,384], index: 5, kind: output, shape index: {}]  }
   0x1   :  { %2047 = sst [smem:[#allocation23_spill]] %s2039_s5 }
   0x2   :  { %10 = vsyncpa [#allocation7], 0 }
   0x3   :  { %11 = vsyncpa [#allocation5], 0 }
   0x4   :  { %12 = vsyncpa [#allocation10], 0 }
   0x5   :  { %13 = vsyncpa [#allocation6], 0 }
   0x6   :  { %15 = vsyncpa [#allocation6 + $0x1], 0  ;;  %s1656_s18 = smov 0   ;;  %s1658_s19 = smov 0  }
   0x7   :  { %s1660_s20 = smov 0   ;;  %s1662_s21 = smov 0  }
   0x8   :  { %s1664_s22 = smov 0   ;;  %s1666_s23 = smov 0  }
   0x9 LB: > { %2048 = sst [smem:[#allocation19_spill]] %s1594_s18  ;;  %s1687_s24 = sadd.s32 4294967295, %s1614_s23   ;;  %s1614_s23 = sphi %s1666_s23, %s21_s23   ;;  %s1610_s22 = sphi %s1664_s22, %s2080_s22   ;;  %s1606_s21 = sphi %s1662_s21, %s2079_s21   ;;  %s1602_s20 = sphi %s1660_s20, %s2078_s20   ;;  %s1598_s19 = sphi %s1658_s19, %s2077_s19   ;;  %s1594_s18 = sphi %s1656_s18, %s2076_s18  }
   0xa   : > { %2049 = sst [smem:[#allocation20_spill]] %s1606_s21  ;;  %s1084_s25 = sadd.s32 4294967294, %s1614_s23  }
   0xb   : > { %p115_p0 = scmp.ne.s32.totalorder %s1602_s20, %s1598_s19  ;;  %p116_p1 = scmp.eq.s32.totalorder %s1614_s23, 0 }
   0xc   : > { %p121_p2 = scmp.ne.s32.totalorder %s1598_s19, %s1594_s18  ;;  %p2040_p3 = scmp.eq.s32.totalorder %s1687_s24, 0 }
   0xd   : > { %p171_p4 = scmp.eq.s32.totalorder %s1687_s24, 2  ;;  %p1698_p5 = por %p116_p1, %p115_p0 }
   0xe   : > { %p177_p6 = scmp.eq.s32.totalorder %s1084_s25, 2  ;;  %p1704_p7 = por %p2040_p3, %p121_p2 }
   0xf   : > { %p1708_p8 = por %p171_p4, %p115_p0  ;;  %p1085_p10 = scmp.ge.s32.totalorder %s1614_s23, 1 }
  0x10   : > { %p1712_p9 = por %p177_p6, %p121_p2  ;;  %p184_p11 = scmp.lt.s32.totalorder %s1614_s23, 4 }
  0x11   : > { %s2052_s29 = scalar_select %p1708_p8, 1, 0 }
  0x12   : > { %s2054_s30 = scalar_select %p1712_p9, 1, 0 }
  0x13   : > { %2053 = sst [smem:[#allocation21_spill]] %s2052_s29  ;;  %p1718_p12 = pnand %p1085_p10, %p184_p11 }
  0x14   : > { %2055 = sst [smem:[#allocation22_spill]] %s2054_s30  ;;  %s1616_s7 = smov [#allocation8]  }
  0x15   : > { %s205_s8 = sshll.u32 %s1616_s7, 4  ;;  %p1303_p13 = pneg %p1718_p12  ;;  %s206_s8 = int_to_ptr.vmem [resolvable:$true] %s205_s8 }
  0x16   : > { %p1327_p0 = scmp.lt.s32.totalorder %s1614_s23, 3  ;;  %s33_s11 = sadd.s32 1, %s1610_s22 }
  0x17   : > { %p1727_p1 = pnand %p1303_p13, %p2040_p3  ;;  %p1738_p4 = scmp.ge.s32.totalorder %s33_s11, 3 }
  0x18   : > { %p1733_p2 = pnand %p1327_p0, %p1698_p5  ;;  %s1414_s13 = scalar_lea.vmem %s206_s8, 1024 }
  0x19   : > { %p1405_p6 = pneg %p1727_p1  ;;  %p1415_p10 = scmp.ne.s32.totalorder %s206_s8, %s1414_s13 }
  0x1a   : > { %p1422_p3 = scmp.lt.s32.totalorder %s206_s8, %s206_s8  ;;  %p1423_p9 = scmp.lt.s32.totalorder %s1414_s13, %s1414_s13 }
  0x1b   : > { %p1417_p11 = pnand %p1415_p10, %p1405_p6 }
  0x1c   : > { %p1424_p8 = por %p1423_p9, %p1422_p3 }
  0x1d   : > { %p1418_p13 = pneg %p1417_p11 }
  0x1f   : > { %p1425_p5 = pnand %p1424_p8, %p1418_p13 }
  0x21   : > { %1428 = shalt.err (!%p1425_p5)
}
  0x22   : > { %s1617_s14 = smov 128   ;;  %s1618_s15 = smov 8  }
  0x23   : > { %1309 = dma.hbm_to_vmem [thread:$0]  (!%p1727_p1), %s2035_s1, 1024, %s206_s8, [#allocation5], %s1617_s14, %s1617_s14, %s1618_s15  }
  0x24   : > { %s235_s25 = sand.u32 1, %s1614_s23   ;;  %s2082_s11 = smov (%p1738_p4, %s33_s11), 0 }
  0x25   : > { %s237_s27 = sand.u32 1, %s1602_s20   ;;  %s105_s7 = ssub.s32 %s1610_s22, %s2082_s11 }
  0x26   : > { %s1090_s13 = sshll.u32 %s237_s27, 7  ;;  %p106_p3 = scmp.eq.s32.totalorder %s105_s7, 0 }
  0x27   : > { %s1143_s26 = sshll.u32 %s1610_s22, 11  ;;  %s239_s30 = scalar_lea.vmem [#allocation11], %s1090_s13 }
  0x28   : > { %s246_s18 = sshll.u32 %s239_s30, 4  ;;  %s2060_s5 = sadd.s32 1, %s1602_s20  ;;  %s247_s18 = int_to_ptr.vmem [resolvable:$true] %s246_s18 }
  0x29   : > { %s1769_s29 = scalar_select %p106_p3, %s1602_s20, %s2060_s5  }
  0x2a   : > { %s245_s8 = scalar_lea.hbm %s2037_s3, %s1143_s26  ;;  %s1774_s12 = scalar_lea.sflag [#allocation5], %s235_s25 }
  0x2b   : > { %p1431_p8 = pneg %p1733_p2  ;;  %s1442_s17 = scalar_lea.vmem %s247_s18, 2048 }
  0x2c   : > { %p1443_p9 = scmp.ne.s32.totalorder %s247_s18, %s1442_s17  ;;  %s1619_s7 = smov [#allocation11]  }
  0x2d   : > { %s1447_s30 = sshll.u32 %s1619_s7, 4  ;;  %s1448_s30 = int_to_ptr.vmem [resolvable:$false] %s1447_s30 }
  0x2e   : > { %p1445_p0 = pnand %p1443_p9, %p1431_p8  ;;  %s1449_s5 = scalar_lea.vmem %s1448_s30, 4096 }
  0x2f   : > { %p1450_p10 = scmp.lt.s32.totalorder %s247_s18, %s1448_s30  ;;  %p1451_p11 = scmp.lt.s32.totalorder %s1449_s5, %s1442_s17 }
  0x30   : > { %p1446_p4 = pneg %p1445_p0 }
  0x31   : > { %p1452_p13 = por %p1451_p11, %p1450_p10 }
  0x33   : > { %p1453_p5 = pnand %p1452_p13, %p1446_p4 }
  0x35   : > { %1456 = shalt.err (!%p1453_p5)
}
  0x36   : > { %1316 = dma.hbm_to_vmem [thread:$0]  (!%p1733_p2), %s245_s8, 2048, %s247_s18, %s1774_s12, %s1617_s14, %s1617_s14, %s1618_s15  }
  0x37   : > { %s1620_s21 = smov [#allocation4]   ;;  %s1621_s13 = smov [#allocation9]  }
  0x38   : > { %1306 = dma.hbm_to_smem (!%p1727_p1), %s2034_s0, 16, %s1620_s21, [#allocation7]  }
  0x39   : > { %s221_s16 = sshll.u32 %s1621_s13, 4  ;;  %s1093_s17 = sshll.u32 %s237_s27, 3  ;;  %s222_s16 = int_to_ptr.vmem [resolvable:$true] %s221_s16 }
  0x3a   : > { %s1479_s7 = scalar_lea.vmem %s222_s16, 1024  ;;  %p1487_p4 = scmp.lt.s32.totalorder %s222_s16, %s222_s16 }
  0x3b   : > { %p1480_p3 = scmp.ne.s32.totalorder %s222_s16, %s1479_s7  ;;  %p1488_p10 = scmp.lt.s32.totalorder %s1479_s7, %s1479_s7 }
  0x3d   : > { %p1482_p9 = pnand %p1480_p3, %p1405_p6  ;;  %p1489_p11 = por %p1488_p10, %p1487_p4 }
  0x3f   : > { %p1483_p0 = pneg %p1482_p9 }
  0x41   : > { %p1490_p13 = pnand %p1489_p11, %p1483_p0 }
  0x43   : > { %1493 = shalt.err (!%p1490_p13)
}
  0x44   : > { %1312 = dma.hbm_to_vmem [thread:$0]  (!%p1727_p1), %s2036_s2, 1024, %s222_s16, [#allocation10], %s1617_s14, %s1617_s14, %s1618_s15  }
  0x45   : > { %s1094_s27 = sshll.u32 %s1610_s22, 7  ;;  %s260_s30 = scalar_lea.vmem [#allocation12], %s1093_s17 }
  0x46   : > { %s267_s5 = sshll.u32 %s260_s30, 4  ;;  %s265_s25 = scalar_lea.hbm %s2038_s4, %s1094_s27  ;;  %s268_s5 = int_to_ptr.vmem [resolvable:$true] %s267_s5 }
  0x47   : > { %s1507_s13 = scalar_lea.vmem %s268_s5, 128  ;;  %s1622_s9 = smov [#allocation12]  }
  0x48   : > { %p1508_p6 = scmp.ne.s32.totalorder %s268_s5, %s1507_s13  ;;  %s1512_s7 = sshll.u32 %s1622_s9, 4  ;;  %s1513_s7 = int_to_ptr.vmem [resolvable:$false] %s1512_s7 }
  0x49   : > { %s1514_s18 = scalar_lea.vmem %s1513_s7, 256  ;;  %p1515_p9 = scmp.lt.s32.totalorder %s268_s5, %s1513_s7 }
  0x4a   : > { %p1510_p5 = pnand %p1508_p6, %p1431_p8  ;;  %p1516_p1 = scmp.lt.s32.totalorder %s1514_s18, %s1507_s13 }
  0x4c   : > { %p1511_p3 = pneg %p1510_p5  ;;  %p1517_p0 = por %p1516_p1, %p1515_p9 }
  0x4e   : > { %p1518_p4 = pnand %p1517_p0, %p1511_p3 }
  0x50   : > { %1521 = shalt.err (!%p1518_p4)
}
  0x51   : > { %1319 = dma.hbm_to_vmem [thread:$0]  (!%p1733_p2), %s265_s25, 128, %s268_s5, %s1774_s12  }
  0x52   : > { %276 = sbr.rel (%p1718_p12) target bundleno = 1110 (0x456), region = 40  ;;  %p2061_p10 = scmp.eq.s32.totalorder (!%p1718_p12), %s1687_s24, 0 }
  0x57   : > { %1573 = dma.done.wait (%p2061_p10), [#allocation7], 16   ;;  %p2062_p8 = pmov %p2061_p10 }
  0x59   : > { %1575 = vsyncadd (%p2062_p8), [#allocation7], 4294967280  ;;  %p2063_p11 = pmov %p2062_p8 }
  0x5a   : > { %p2064_p13 = pmov %p2062_p8 }
  0x5b   : > { %1577 = dma.done.wait (%p2063_p11), [#allocation5], 1024  }
  0x5c   : > { %1579 = vsyncadd (%p2064_p13), [#allocation5], 4294966272  ;;  %p2065_p6 = pmov %p2062_p8 }
  0x5e   : > { %1581 = dma.done.wait (%p2065_p6), [#allocation10], 1024   ;;  %p2066_p2 = pmov %p2065_p6 }
  0x5f   : > { %s290_s6 = sand.u32 1, %s1687_s24   ;;  %s1831_s10 = sand.u32 1, %s1598_s19  }
  0x60   : > { %1583 = vsyncadd (%p2066_p2), [#allocation10], 4294966272  ;;  %s1099_s14 = sshll.u32 %s1831_s10, 7  ;;  %s291_s15 = scalar_lea.sflag [#allocation5], %s290_s6 }
  0x61   : > { %s1834_s12 = scalar_lea.vmem [#allocation11], %s1099_s14 }
  0x62   : > { %1585 = dma.done.wait (%p1704_p7), %s291_s15, 2176  }
  0x63   : > { %1587 = vsyncadd (%p1704_p7), %s291_s15, 4294965120  ;;  %s1100_s16 = sshll.u32 %s1831_s10, 3 }
  0x64   : > { %s1841_s17 = scalar_lea.vmem [#allocation12], %s1100_s16 }
  0x65   : > { %308 = sfence }
  0x66   : > { %s2067_s8 = sld [smem:[#allocation20_spill]]  ;;  %s1844_s24 = scalar_lea.vmem [#allocation13], %s1100_s16 }
  0x6c   : > { %p337_p12 = scmp.eq.s32.totalorder %s2067_s8, 0 }
  0x6d   : > { %v343_v0 = vld [vmem:[#allocation8] sm:$0xff] (%p337_p12)  ;;  %v344_v1 = vld [vmem:[#allocation8 + $0x8] sm:$0xff] (%p337_p12)  ;;  %v345_v2 = vld [vmem:[#allocation8 + $0x10] sm:$0xff] (%p337_p12) }
  0x6e   : > { %342 = sbr.rel (!%p337_p12) target bundleno = 115 (0x73), region = 64  ;;  %351 = vst [vmem:[#allocation2 + $0x30] sm:$0xff] (%p337_p12), %v343_v0  ;;  %352 = vst [vmem:[#allocation2] sm:$0xff] (%p337_p12), %v344_v1  ;;  %v346_v3 = vld [vmem:[#allocation8 + $0x18] sm:$0xff] (%p337_p12)  ;;  %v347_v4 = vld [vmem:[#allocation8 + $0x20] sm:$0xff] (%p337_p12) }
  0x6f   : > { %353 = vst [vmem:[#allocation2 + $0x18] sm:$0xff] (%p337_p12), %v345_v2  ;;  %v348_v5 = vld [vmem:[#allocation8 + $0x28] sm:$0xff] (%p337_p12)  ;;  %354 = vst [vmem:[#allocation2 + $0x10] sm:$0xff] (%p337_p12), %v346_v3  ;;  %v349_v6 = vld [vmem:[#allocation8 + $0x30] sm:$0xff] (%p337_p12) }
  0x70   : > { %355 = vst [vmem:[#allocation2 + $0x8] sm:$0xff] (%p337_p12), %v347_v4  ;;  %356 = vst [vmem:[#allocation2 + $0x20] sm:$0xff] (%p337_p12), %v348_v5  ;;  %v350_v7 = vld [vmem:[#allocation8 + $0x38] sm:$0xff] (%p337_p12) }
  0x71   : > { %357 = vst [vmem:[#allocation2 + $0x28] sm:$0xff] (%p337_p12), %v349_v6  ;;  %358 = vst [vmem:[#allocation2 + $0x38] sm:$0xff] (%p337_p12), %v350_v7 }
  0x73 PF: > { %v385_v8 = vld [vmem:[%s1834_s12 + $0x78] sm:$0xff]  ;;  %v384_v9 = vld [vmem:[%s1834_s12 + $0x70] sm:$0xff]  ;;  %v383_v10 = vld [vmem:[%s1834_s12 + $0x68] sm:$0xff]  ;;  %vm522_vm0 = vcmask 523264   ;;  %vm1624_vm2 = vmmov 0   ;;  %s798_s28 = sld [smem:[#allocation4]] }
  0x74   : > { %1194 = vmatprep.subr.mxu0 %v385_v8  ;;  %v382_v11 = vld [vmem:[%s1834_s12 + $0x60] sm:$0xff]  ;;  %v381_v13 = vld [vmem:[%s1834_s12 + $0x58] sm:$0xff]  ;;  %v380_v14 = vld [vmem:[%s1834_s12 + $0x50] sm:$0xff]  ;;  %s1117_s27 = sld [smem:[#allocation4 + $0x1]]  ;;  %vm846_vm6 = vcmask 1040384   ;;  %vm848_vm7 = vcmask 1041408  }
  0x75   : > { %1195 = vmatpush3.msra.mxu0 %v385_v8  ;;  %v362_v12 = vld [vmem:[#allocation2 + $0x30] sm:$0xff]  ;;  %v379_v15 = vld [vmem:[%s1834_s12 + $0x48] sm:$0xff]  ;;  %v378_v16 = vld [vmem:[%s1834_s12 + $0x40] sm:$0xff]  ;;  %v1623_v8 = vmov 0.0   ;;  %s1915_s30 = sld [smem:[#allocation4 + $0x2]]  ;;  %vm850_vm10 = vcmask 1042432  }
  0x76   : > { %1196 = vmatprep.subr.mxu0 %v384_v9  ;;  %1226 = vmatprep.mubr.f32.mxu0 %v362_v12  ;;  %v377_v17 = vld [vmem:[%s1834_s12 + $0x38] sm:$0xff]  ;;  %v376_v18 = vld [vmem:[%s1834_s12 + $0x30] sm:$0xff]  ;;  %v375_v19 = vld [vmem:[%s1834_s12 + $0x28] sm:$0xff]  ;;  %s1917_s5 = sld [smem:[#allocation4 + $0x3]]  ;;  %vm852_vm12 = vcmask 1043456   ;;  %vm854_vm14 = vcmask 1044480  }
  0x77   : > { %1197 = vmatpush3.msra.mxu0 %v384_v9  ;;  %v374_v20 = vld [vmem:[%s1834_s12 + $0x20] sm:$0xff]  ;;  %v373_v21 = vld [vmem:[%s1834_s12 + $0x18] sm:$0xff]  ;;  %v372_v22 = vld [vmem:[%s1834_s12 + $0x10] sm:$0xff]  ;;  %s1919_s25 = sld [smem:[#allocation4 + $0x4]] }
  0x78   : > { %1198 = vmatprep.subr.mxu0 %v383_v10  ;;  %v371_v23 = vld [vmem:[%s1834_s12 + $0x8] sm:$0xff]  ;;  %v370_v24 = vld [vmem:[%s1834_s12] sm:$0xff]  ;;  %v364_v26 = vld [vmem:[#allocation2 + $0x18] sm:$0xff]  ;;  %s1922_s9 = sld [smem:[#allocation4 + $0x5]] }
  0x79   : > { %1199 = vmatpush3.msra.mxu0 %v383_v10  ;;  %v363_v25 = vld [vmem:[#allocation2] sm:$0xff]  ;;  %v365_v27 = vld [vmem:[#allocation2 + $0x10] sm:$0xff]  ;;  %v366_v28 = vld [vmem:[#allocation2 + $0x8] sm:$0xff]  ;;  %v660_v10 = vlaneseq  ;;  %s1115_s21 = sadd.s32 4294967295, %s798_s28  ;;  %s1925_s7 = sld [smem:[#allocation4 + $0x6]] }
  0x7a   : > { %1200 = vmatprep.subr.mxu0 %v382_v11  ;;  %v367_v29 = vld [vmem:[#allocation2 + $0x20] sm:$0xff]  ;;  %v368_v30 = vld [vmem:[#allocation2 + $0x28] sm:$0xff]  ;;  %v369_v31 = vld [vmem:[#allocation2 + $0x38] sm:$0xff]  ;;  %s1118_s26 = sadd.s32 4294967295, %s1117_s27  ;;  %s1937_s14 = sld [smem:[#allocation4 + $0x7]] }
  0x7b   : > { %1201 = vmatpush3.msra.mxu0 %v382_v11  ;;  %v506_v32 = vld [vmem:[#allocation9] sm:$0xff]  ;;  %v507_v50 = vld [vmem:[#allocation9 + $0x8] sm:$0xff]  ;;  %v508_v51 = vld [vmem:[#allocation9 + $0x10] sm:$0xff]  ;;  %v1878_v12 = vand.u32 127, %v660_v10  ;;  %s1121_s13 = sadd.s32 4294967295, %s1915_s30  ;;  %s2069_s8 = sld [smem:[#allocation21_spill]] }
  0x7c   : > { %1202 = vmatprep.subr.mxu0 %v381_v13  ;;  %1254 = vmatprep.mubr.msk.f32.mxu1 %vm522_vm0, %v506_v32  ;;  %v1103_v39 = vld [vmem:[%s1841_s17] ss:$0 sm:$0xff]  ;;  %v509_v52 = vld [vmem:[#allocation9 + $0x18] sm:$0xff]  ;;  %v512_v55 = vld [vmem:[#allocation9 + $0x30] sm:$0xff]  ;;  %s1124_s18 = sadd.s32 4294967295, %s1917_s5  ;;  %s950_s27 = sshll.u32 %s1844_s24, 4  ;;  %s951_s27 = int_to_ptr.vmem [resolvable:$true] %s950_s27 }
  0x7d   : > { %1203 = vmatpush3.msra.mxu0 %v381_v13  ;;  %v510_v53 = vld [vmem:[#allocation9 + $0x20] sm:$0xff]  ;;  %v511_v54 = vld [vmem:[#allocation9 + $0x28] sm:$0xff]  ;;  %v513_v56 = vld [vmem:[#allocation9 + $0x38] sm:$0xff]  ;;  %vm662_vm1 = vcmp.lt.s32.totalorder %v1878_v12, 32  ;;  %s1127_s6 = sadd.s32 4294967295, %s1919_s25 }
  0x7e   : > { %1204 = vmatprep.subr.mxu0 %v380_v14  ;;  %s1130_s15 = sadd.s32 4294967295, %s1922_s9  ;;  %s1522_s9 = scalar_lea.vmem %s951_s27, 128 }
  0x7f   : > { %1205 = vmatpush3.msra.mxu0 %v380_v14  ;;  %s1133_s12 = sadd.s32 4294967295, %s1925_s7  ;;  %p1523_p7 = scmp.ne.s32.totalorder %s951_s27, %s1522_s9 }
  0x80   : > { %1206 = vmatprep.subr.mxu0 %v379_v15  ;;  %s1136_s16 = sadd.s32 4294967295, %s1937_s14  ;;  %s1625_s7 = smov [#allocation13]  }
  0x81   : > { %1207 = vmatpush3.msra.mxu0 %v379_v15  ;;  %p2072_p5 = scmp.ne.s32.totalorder %s2069_s8, 0 }
  0x82   : > { %1208 = vmatprep.subr.mxu0 %v378_v16 }
  0x83   : > { %1209 = vmatpush3.msra.mxu0 %v378_v16  ;;  %p1524_p3 = pnand %p1523_p7, %p2072_p5 }
  0x84   : > { %1210 = vmatprep.subr.mxu0 %v377_v17 }
  0x85   : > { %1211 = vmatpush3.msra.mxu0 %v377_v17  ;;  %p1525_p9 = pneg %p1524_p3 }
  0x86   : > { %1212 = vmatprep.subr.mxu0 %v376_v18 }
  0x87   : > { %1213 = vmatpush3.msra.mxu0 %v376_v18 }
  0x88   : > { %1214 = vmatprep.subr.mxu0 %v375_v19 }
  0x89   : > { %1215 = vmatpush3.msra.mxu0 %v375_v19 }
  0x8a   : > { %1216 = vmatprep.subr.mxu0 %v374_v20 }
  0x8b   : > { %1217 = vmatpush3.msra.mxu0 %v374_v20  ;;  %v1112_v20 = vsel %vm662_vm1, 1.0, %v1623_v8  ;;  %vm856_vm1 = vcmask 1045504  }
  0x8c   : > { %1218 = vmatprep.subr.mxu0 %v373_v21 }
  0x8d   : > { %1219 = vmatpush3.msra.mxu0 %v373_v21 }
  0x8e   : > { %1220 = vmatprep.subr.mxu0 %v372_v22 }
  0x8f   : > { %1221 = vmatpush3.msra.mxu0 %v372_v22 }
  0x90   : > { %1222 = vmatprep.subr.mxu0 %v371_v23 }
  0x91   : > { %1223 = vmatpush3.msra.mxu0 %v371_v23 }
  0x92   : > { %1224 = vmatprep.subr.mxu0 %v370_v24 }
  0x93   : > { %1225 = vmatpush3.msra.mxu0 %v370_v24 }
  0x94   : > { %1227 = vmatmul.mubr.f32.vlgmr.msra.gmra.mxu0 %v363_v25 }
  0x95   : > { %1229 = vmatprep.mubr.f32.mxu0 %v364_v26 }
  0x98   : > { %1230 = vmatmul.mubr.f32.gmra.mxu0 %v365_v27 }
  0x99   : > { %1232 = vmatprep.mubr.f32.mxu0 %v366_v28 }
  0x9c   : > { %1233 = vmatmul.mubr.f32.gmra.mxu0 %v367_v29 }
  0x9d   : > { %1235 = vmatprep.mubr.f32.mxu0 %v368_v30 }
  0xa0   : > { %1236 = vmatmul.mubr.f32.gmra.mxu0 %v369_v31 }
 0x154   : > { %v1228_v33 = vpop.f32.mrf.mxu0 }
 0x155   : > { %v463_v48 = vadd.f32 %v1228_v33, %v1103_v39 }
 0x156   : > { %v457_v34 = vpop.f32.mrf.mxu0 }
 0x157   : > { %v458_v49 = vadd.f32 %v1103_v39, %v457_v34 }
 0x158   : > { %v1231_v35 = vpop.f32.mrf.mxu0 }
 0x159   : > { %v473_v46 = vadd.f32 %v1231_v35, %v1103_v39 }
 0x15a   : > { %v467_v36 = vpop.f32.mrf.mxu0 }
 0x15b   : > { %v468_v47 = vadd.f32 %v1103_v39, %v467_v36 }
 0x15c   : > { %v1234_v37 = vpop.f32.mrf.mxu0 }
 0x15d   : > { %v483_v44 = vadd.f32 %v1234_v37, %v1103_v39 }
 0x15e   : > { %v477_v38 = vpop.f32.mrf.mxu0 }
 0x15f   : > { %v478_v45 = vadd.f32 %v1103_v39, %v477_v38 }
 0x160   : > { %v1237_v40 = vpop.f32.mrf.mxu0 }
 0x161   : > { %v493_v41 = vadd.f32 %v1237_v40, %v1103_v39 }
 0x162   : > { %v487_v42 = vpop.f32.mrf.mxu0 }
 0x163   : > { %v488_v43 = vadd.f32 %v1103_v39, %v487_v42  ;;  %1238 = vmatprep.subr.mxu1 %v493_v41 }
 0x164   : > { %1239 = vmatpush3.msra.mxu1 %v493_v41 }
 0x165   : > { %1240 = vmatprep.subr.mxu1 %v488_v43 }
 0x166   : > { %1241 = vmatpush3.msra.mxu1 %v488_v43 }
 0x167   : > { %1242 = vmatprep.subr.mxu1 %v483_v44 }
 0x168   : > { %1243 = vmatpush3.msra.mxu1 %v483_v44 }
 0x169   : > { %1244 = vmatprep.subr.mxu1 %v478_v45 }
 0x16a   : > { %1245 = vmatpush3.msra.mxu1 %v478_v45 }
 0x16b   : > { %1246 = vmatprep.subr.mxu1 %v473_v46 }
 0x16c   : > { %1247 = vmatpush3.msra.mxu1 %v473_v46 }
 0x16d   : > { %1248 = vmatprep.subr.mxu1 %v468_v47 }
 0x16e   : > { %1249 = vmatpush3.msra.mxu1 %v468_v47 }
 0x16f   : > { %1250 = vmatprep.subr.mxu1 %v463_v48 }
 0x170   : > { %1251 = vmatpush3.msra.mxu1 %v463_v48 }
 0x171   : > { %1252 = vmatprep.subr.mxu1 %v458_v49 }
 0x172   : > { %1253 = vmatpush3.msra.mxu1 %v458_v49 }
 0x173   : > { %1255 = vmatmul.mubr.msk.f32.vlgmr.msra.gmra.mxu1 %vm522_vm0, %v507_v50  ;;  %1266 = vmatprep.subr.mxu1 %v1623_v8 }
 0x174   : > { %1257 = vmatprep.mubr.msk.f32.mxu1 %vm522_vm0, %v508_v51 }
 0x177   : > { %1258 = vmatmul.mubr.msk.f32.gmra.mxu1 %vm522_vm0, %v509_v52 }
 0x178   : > { %1260 = vmatprep.mubr.msk.f32.mxu1 %vm522_vm0, %v510_v53 }
 0x17b   : > { %1261 = vmatmul.mubr.msk.f32.gmra.mxu1 %vm522_vm0, %v511_v54 }
 0x17c   : > { %1263 = vmatprep.mubr.msk.f32.mxu1 %vm522_vm0, %v512_v55 }
 0x17f   : > { %1264 = vmatmul.mubr.msk.f32.gmra.mxu1 %vm522_vm0, %v513_v56 }
 0x180   : > { %1282 = vmatprep.mubr.msk.f32.mxu1 %vm1624_vm2, %v1623_v8  ;;  %vm858_vm2 = vcmask 1046528  }
 0x233   : > { %v1871_v57 = vpop.f32.mrf.mxu1 }
 0x234   : > { %v653_v9 = vmax.f32 %v1871_v57, 0.0 }
 0x235   : > { %v1873_v58 = vpop.f32.mrf.mxu1 }
 0x236   : > { %v652_v6 = vmax.f32 %v1873_v58, 0.0 }
 0x237   : > { %v1259_v59 = vpop.f32.mrf.mxu1 }
 0x238   : > { %v655_v7 = vmax.f32 %v1259_v59, 0.0 }
 0x239   : > { %v623_v60 = vpop.f32.mrf.mxu1 }
 0x23a   : > { %v654_v4 = vmax.f32 %v623_v60, 0.0 }
 0x23b   : > { %v1262_v61 = vpop.f32.mrf.mxu1 }
 0x23c   : > { %v657_v62 = vmax.f32 %v1262_v61, 0.0 }
 0x23d   : > { %v633_v63 = vpop.f32.mrf.mxu1 }
 0x23e   : > { %675 = vadd.xlane.f32.xlu1 %v657_v62  ;;  %v656_v1 = vmax.f32 %v633_v63, 0.0 }
 0x23f   : > { %v1265_v0 = vpop.f32.mrf.mxu1 }
 0x240   : > { %v659_v2 = vmax.f32 %v1265_v0, 0.0 }
 0x241   : > { %v643_v3 = vpop.f32.mrf.mxu1 }
 0x242   : > { %673 = vadd.xlane.f32.xlu1 %v656_v1  ;;  %679 = vadd.xlane.f32.xlu0 %v659_v2  ;;  %v658_v5 = vmax.f32 %v643_v3, 0.0 }
 0x246   : > { %669 = vadd.xlane.f32.xlu1 %v654_v4  ;;  %677 = vadd.xlane.f32.xlu0 %v658_v5 }
 0x24a   : > { %665 = vadd.xlane.f32.xlu1 %v652_v6  ;;  %671 = vadd.xlane.f32.xlu0 %v655_v7 }
 0x24e   : > { %667 = vadd.xlane.f32.xlu0 %v653_v9 }
 0x2c7   : > { %v676_v11 = vpop.xlane.xlu1 %675 }
 0x2c8   : > { %v686_v13 = vmul.f32 0.03125, %v676_v11  ;;  %v812_v11 = vstv %s1121_s13  ;;  %s937_s13 = scalar_lea.sflag [#allocation6], %s1831_s10 }
 0x2c9   : > { %vm813_vm5 = vcmp.eq.s32.totalorder %v1878_v12, %v812_v11 }
 0x2ca   : > { %v694_v17 = vsub.f32 %v657_v62, %v686_v13 }
 0x2cb   : > { %v674_v14 = vpop.xlane.xlu1 %673  ;;  %v680_v15 = vpop.xlane.xlu0 %679 }
 0x2cc   : > { %v688_v16 = vmul.f32 0.03125, %v680_v15  ;;  %v685_v18 = vmul.f32 0.03125, %v674_v14  ;;  %v1884_v26 = vmul.f32 %v1112_v20, %v694_v17 }
 0x2ce   : > { %v696_v19 = vsub.f32 %v659_v2, %v688_v16  ;;  %v693_v25 = vsub.f32 %v656_v1, %v685_v18  ;;  %v710_v34 = vmul.f32 %v1884_v26, %v1884_v26 }
 0x2cf   : > { %v670_v21 = vpop.xlane.xlu1 %669  ;;  %v678_v22 = vpop.xlane.xlu0 %677 }
 0x2d0   : > { %v687_v23 = vmul.f32 0.03125, %v678_v22  ;;  %v1882_v24 = vmul.f32 %v1112_v20, %v696_v19  ;;  %v683_v27 = vmul.f32 0.03125, %v670_v21  ;;  %v1892_v35 = vmul.f32 %v1112_v20, %v693_v25  ;;  %v1933_v19 = vld [vmem:[%s1841_s17 + $0x1] ss:$0 sm:$0xff]  ;;  %v1940_v25 = vld [vmem:[%s1841_s17 + $0x2] ss:$0 sm:$0xff] }
 0x2d1   : > { %v818_v21 = vstv %s1124_s18  ;;  %s2068_s17 = sld [smem:[#allocation20_spill]]  ;;  %s1526_s18 = sshll.u32 %s1625_s7, 4  ;;  %s1527_s18 = int_to_ptr.vmem [resolvable:$false] %s1526_s18 }
 0x2d2   : > { %v695_v28 = vsub.f32 %v658_v5, %v687_v23  ;;  %v712_v29 = vmul.f32 %v1882_v24, %v1882_v24  ;;  %v691_v36 = vsub.f32 %v654_v4, %v683_v27  ;;  %v709_v43 = vmul.f32 %v1892_v35, %v1892_v35  ;;  %p1529_p1 = scmp.lt.s32.totalorder %s951_s27, %s1527_s18 }
 0x2d3   : > { %v666_v30 = vpop.xlane.xlu1 %665  ;;  %v672_v31 = vpop.xlane.xlu0 %671  ;;  %v800_v4 = vstv %s1115_s21  ;;  %v1122_v27 = vsel %vm813_vm5, 1.0, %v1623_v8  ;;  %vm819_vm8 = vcmp.eq.s32.totalorder %v1878_v12, %v818_v21  ;;  %s2070_s21 = sld [smem:[#allocation23_spill]] }
 0x2d4   : > { %v684_v32 = vmul.f32 0.03125, %v672_v31  ;;  %727 = vadd.xlane.f32.xlu0 %v712_v29  ;;  %v1888_v33 = vmul.f32 %v1112_v20, %v695_v28  ;;  %v681_v37 = vmul.f32 0.03125, %v666_v30  ;;  %v1902_v47 = vmul.f32 %v1112_v20, %v691_v36 }
 0x2d5   : > { %vm801_vm3 = vcmp.eq.s32.totalorder %v1878_v12, %v800_v4  ;;  %v824_v28 = vstv %s1127_s6  ;;  %v830_v36 = vstv %s1130_s15  ;;  %s1528_s6 = scalar_lea.vmem %s1527_s18, 256 }
 0x2d6   : > { %v692_v38 = vsub.f32 %v655_v7, %v684_v32  ;;  %v711_v39 = vmul.f32 %v1888_v33, %v1888_v33  ;;  %v689_v44 = vsub.f32 %v652_v6, %v681_v37  ;;  %v707_v49 = vmul.f32 %v1902_v47, %v1902_v47  ;;  %p1530_p0 = scmp.lt.s32.totalorder %s1528_s6, %s1522_s9 }
 0x2d7   : > { %v668_v40 = vpop.xlane.xlu0 %667  ;;  %v806_v7 = vstv %s1118_s26  ;;  %v1116_v17 = vsel %vm801_vm3, 1.0, %v1623_v8  ;;  %vm825_vm9 = vcmp.eq.s32.totalorder %v1878_v12, %v824_v28  ;;  %vm831_vm11 = vcmp.eq.s32.totalorder %v1878_v12, %v830_v36  ;;  %s1140_s28 = sshll.u32 %s2068_s17, 7 }
 0x2d8   : > { %v682_v41 = vmul.f32 0.03125, %v668_v40  ;;  %723 = vadd.xlane.f32.xlu0 %v710_v34  ;;  %725 = vadd.xlane.f32.xlu1 %v711_v39  ;;  %v1896_v42 = vmul.f32 %v1112_v20, %v692_v38  ;;  %v1910_v51 = vmul.f32 %v1112_v20, %v689_v44  ;;  %vm807_vm4 = vcmp.eq.s32.totalorder %v1878_v12, %v806_v7  ;;  %p1531_p4 = por %p1530_p0, %p1529_p1 }
 0x2d9   : > { %v1125_v38 = vsel %vm819_vm8, 1.0, %v1623_v8  ;;  %v836_v44 = vstv %s1133_s12  ;;  %s2071_s26 = smov %s2070_s21  ;;  %s1992_s25 = scalar_lea.hbm %s2070_s21, %s1140_s28 }
 0x2da   : > { %v690_v45 = vsub.f32 %v653_v9, %v682_v41  ;;  %v708_v46 = vmul.f32 %v1896_v42, %v1896_v42  ;;  %v705_v52 = vmul.f32 %v1910_v51, %v1910_v51  ;;  %vm837_vm13 = vcmp.eq.s32.totalorder %v1878_v12, %v836_v44  ;;  %p1532_p10 = pnand %p1531_p4, %p1525_p9 }
 0x2dc   : > { %721 = vadd.xlane.f32.xlu1 %v709_v43  ;;  %719 = vadd.xlane.f32.xlu0 %v708_v46  ;;  %v1904_v48 = vmul.f32 %v1112_v20, %v690_v45  ;;  %v1119_v20 = vsel %vm807_vm4, 1.0, %v1623_v8  ;;  %v1128_v43 = vsel %vm825_vm9, 1.0, %v1623_v8 }
 0x2dd   : > { %v847_v30 = vsel %vm846_vm6, %v1116_v17, %v1119_v20 }
 0x2de   : > { %v706_v50 = vmul.f32 %v1904_v48, %v1904_v48  ;;  %v849_v39 = vsel %vm848_vm7, %v847_v30, %v1122_v27 }
 0x2e0   : > { %717 = vadd.xlane.f32.xlu1 %v707_v49  ;;  %715 = vadd.xlane.f32.xlu0 %v706_v50  ;;  %v851_v49 = vsel %vm850_vm10, %v849_v39, %v1125_v38 }
 0x2e4   : > { %713 = vadd.xlane.f32.xlu1 %v705_v52 }
 0x35d   : > { %v728_v53 = vpop.xlane.xlu0 %727 }
 0x35e   : > { %v736_v54 = vmul.f32 0.03125, %v728_v53 }
 0x360   : > { %v744_v55 = vadd.f32 1e-05, %v736_v54  ;;  %v1131_v54 = vsel %vm831_vm11, 1.0, %v1623_v8 }
 0x361   : > { %v726_v56 = vpop.xlane.xlu1 %725  ;;  %v724_v57 = vpop.xlane.xlu0 %723 }
 0x362   : > { %1387 = vrsqrt.f32 %v744_v55  ;;  %v735_v58 = vmul.f32 0.03125, %v726_v56  ;;  %v734_v59 = vmul.f32 0.03125, %v724_v57  ;;  %v842_v56 = vstv %s1136_s16 }
 0x363   : > { %v853_v57 = vsel %vm852_vm12, %v851_v49, %v1128_v43  ;;  %vm843_vm15 = vcmp.eq.s32.totalorder %v1878_v12, %v842_v56 }
 0x364   : > { %v743_v60 = vadd.f32 1e-05, %v735_v58  ;;  %v742_v61 = vadd.f32 1e-05, %v734_v59  ;;  %v1137_v12 = vsel %vm843_vm15, 1.0, %v1623_v8 }
 0x365   : > { %v722_v62 = vpop.xlane.xlu1 %721  ;;  %v720_v63 = vpop.xlane.xlu0 %719 }
 0x366   : > { %1389 = vrsqrt.f32 %v743_v60  ;;  %v733_v0 = vmul.f32 0.03125, %v722_v62  ;;  %v732_v1 = vmul.f32 0.03125, %v720_v63  ;;  %v1134_v62 = vsel %vm837_vm13, 1.0, %v1623_v8 }
 0x367   : > { %1391 = vrsqrt.f32 %v742_v61 }
 0x368   : > { %v741_v2 = vadd.f32 1e-05, %v733_v0  ;;  %v740_v3 = vadd.f32 1e-05, %v732_v1  ;;  %v855_v0 = vsel %vm854_vm14, %v853_v57, %v1131_v54 }
 0x369   : > { %v718_v5 = vpop.xlane.xlu1 %717  ;;  %v716_v6 = vpop.xlane.xlu0 %715  ;;  %v857_v4 = vsel %vm856_vm1, %v855_v0, %v1134_v62 }
 0x36a   : > { %1393 = vrsqrt.f32 %v741_v2  ;;  %v731_v9 = vmul.f32 0.03125, %v718_v5  ;;  %v730_v10 = vmul.f32 0.03125, %v716_v6  ;;  %v859_v6 = vsel %vm858_vm2, %v857_v4, %v1137_v12 }
 0x36b   : > { %1395 = vrsqrt.f32 %v740_v3 }
 0x36c   : > { %v739_v13 = vadd.f32 1e-05, %v731_v9  ;;  %v738_v14 = vadd.f32 1e-05, %v730_v10 }
 0x36d   : > { %v714_v15 = vpop.xlane.xlu1 %713 }
 0x36e   : > { %1397 = vrsqrt.f32 %v739_v13  ;;  %v729_v16 = vmul.f32 0.03125, %v714_v15 }
 0x36f   : > { %v1388_v18 = vpop.eup %1387  ;;  %1399 = vrsqrt.f32 %v738_v14 }
 0x370   : > { %v737_v22 = vadd.f32 1e-05, %v729_v16  ;;  %v760_v23 = vmul.f32 %v1388_v18, %v1882_v24 }
 0x372   : > { %1401 = vrsqrt.f32 %v737_v22  ;;  %v773_v29 = vmul.f32 %v1933_v19, %v760_v23 }
 0x373   : > { %v1390_v31 = vpop.eup %1389 }
 0x374   : > { %v1392_v32 = vpop.eup %1391  ;;  %v786_v24 = vadd.f32 %v1940_v25, %v773_v29  ;;  %v759_v34 = vmul.f32 %v1390_v31, %v1888_v33 }
 0x375   : > { %v758_v37 = vmul.f32 %v1392_v32, %v1884_v26 }
 0x376   : > { %795 = vst [vmem:[#allocation2 + $0x38] sm:$0xff] %v786_v24  ;;  %1267 = vmatpush3.msra.mxu1 %v786_v24  ;;  %v772_v40 = vmul.f32 %v1933_v19, %v759_v34 }
 0x377   : > { %v1394_v41 = vpop.eup %1393  ;;  %1268 = vmatprep.subr.mxu1 %v1623_v8  ;;  %v771_v33 = vmul.f32 %v1933_v19, %v758_v37 }
 0x378   : > { %v1396_v26 = vpop.eup %1395  ;;  %v785_v45 = vadd.f32 %v1940_v25, %v772_v40  ;;  %v757_v46 = vmul.f32 %v1394_v41, %v1892_v35 }
 0x379   : > { %v784_v50 = vadd.f32 %v1940_v25, %v771_v33  ;;  %v756_v52 = vmul.f32 %v1396_v26, %v1896_v42 }
 0x37a   : > { %794 = vst [vmem:[#allocation2 + $0x28] sm:$0xff] %v785_v45  ;;  %1269 = vmatpush3.msra.mxu1 %v785_v45  ;;  %v770_v53 = vmul.f32 %v1933_v19, %v757_v46 }
 0x37b   : > { %v1398_v55 = vpop.eup %1397  ;;  %1270 = vmatprep.subr.mxu1 %v1623_v8  ;;  %793 = vst [vmem:[#allocation2 + $0x20] sm:$0xff] %v784_v50  ;;  %v769_v35 = vmul.f32 %v1933_v19, %v756_v52 }
 0x37c   : > { %v1400_v58 = vpop.eup %1399  ;;  %1271 = vmatpush3.msra.mxu1 %v784_v50  ;;  %v783_v42 = vadd.f32 %v1940_v25, %v770_v53  ;;  %v755_v59 = vmul.f32 %v1398_v55, %v1902_v47 }
 0x37d   : > { %1272 = vmatprep.subr.mxu1 %v1623_v8  ;;  %v782_v60 = vadd.f32 %v1940_v25, %v769_v35  ;;  %v754_v61 = vmul.f32 %v1400_v58, %v1904_v48 }
 0x37e   : > { %792 = vst [vmem:[#allocation2 + $0x8] sm:$0xff] %v783_v42  ;;  %1273 = vmatpush3.msra.mxu1 %v783_v42  ;;  %v768_v63 = vmul.f32 %v1933_v19, %v755_v59 }
 0x37f   : > { %v1402_v1 = vpop.eup %1401  ;;  %1274 = vmatprep.subr.mxu1 %v1623_v8  ;;  %791 = vst [vmem:[#allocation2 + $0x10] sm:$0xff] %v782_v60  ;;  %v767_v47 = vmul.f32 %v1933_v19, %v754_v61 }
 0x380   : > { %1275 = vmatpush3.msra.mxu1 %v782_v60  ;;  %v781_v2 = vadd.f32 %v1940_v25, %v768_v63  ;;  %v753_v48 = vmul.f32 %v1402_v1, %v1910_v51 }
 0x381   : > { %1276 = vmatprep.subr.mxu1 %v1623_v8  ;;  %v780_v3 = vadd.f32 %v1940_v25, %v767_v47 }
 0x382   : > { %790 = vst [vmem:[#allocation2 + $0x18] sm:$0xff] %v781_v2  ;;  %1277 = vmatpush3.msra.mxu1 %v781_v2  ;;  %v766_v5 = vmul.f32 %v1933_v19, %v753_v48 }
 0x383   : > { %1278 = vmatprep.subr.mxu1 %v1623_v8  ;;  %789 = vst [vmem:[#allocation2] sm:$0xff] %v780_v3 }
 0x384   : > { %1279 = vmatpush3.msra.mxu1 %v780_v3  ;;  %v779_v51 = vadd.f32 %v1940_v25, %v766_v5 }
 0x385   : > { %1280 = vmatprep.subr.mxu1 %v1623_v8 }
 0x386   : > { %788 = vst [vmem:[#allocation2 + $0x30] sm:$0xff] %v779_v51  ;;  %1281 = vmatpush3.msra.mxu1 %v779_v51 }
 0x387   : > { %1283 = vmatmul.mubr.msk.f32.vlgmr.msra.gmra.mxu1 %vm522_vm0, %v859_v6 }
 0x447   : > { %v930_v7 = vpop.f32.mrf.mxu1 }
 0x448   : > { %935 = vst [vmem:[%s1844_s24] sm:$0xff] %v930_v7 }
 0x449   : > { %v1284_v9 = vpop.f32.mrf.mxu1 }
 0x44a   : > { %1535 = shalt.err (!%p1532_p10)
}
 0x44b   : > { %s1536_s24 = scalar_lea.hbm %s1992_s25, 128  ;;  %s1540_s15 = scalar_lea.hbm %s2071_s26, 384 }
 0x44c   : > { %p1537_p8 = scmp.ne.s32.totalorder %s1992_s25, %s1536_s24  ;;  %p1541_p6 = scmp.lt.s32.totalorder %s1992_s25, %s2071_s26 }
 0x44d   : > { %p1542_p2 = scmp.lt.s32.totalorder %s1540_s15, %s1536_s24 }
 0x44e   : > { %p1538_p11 = pnand %p1537_p8, %p2072_p5 }
 0x44f   : > { %p1543_p12 = por %p1542_p2, %p1541_p6 }
 0x450   : > { %p1539_p13 = pneg %p1538_p11 }
 0x452   : > { %p1544_p7 = pnand %p1543_p12, %p1539_p13 }
 0x454   : > { %1547 = shalt.err (!%p1544_p7)
}
 0x455   : > { %1301 = dma.vmem_to_hbm [thread:$0]  (%p2072_p5), %s951_s27, 128, %s1992_s25, %s937_s13  }
 0x456 PF: > { %s2073_s17 = sld [smem:[#allocation19_spill]]  ;;  %p1331_p3 = scmp.ge.s32.totalorder %s1614_s23, 2 }
 0x457   : > { %s2074_s28 = sld [smem:[#allocation22_spill]] }
 0x45c   : > { %s962_s30 = sand.u32 1, %s2073_s17  }
 0x45d   : > { %p2075_p9 = scmp.ne.s32.totalorder %s2074_s28, 0  ;;  %s963_s5 = scalar_lea.sflag [#allocation6], %s962_s30 }
 0x45f   : > { %p1321_p1 = pnand %p1331_p3, %p2075_p9 }
 0x461   : > { %p1322_p0 = pneg %p1321_p1 }
 0x463   : > { %1589 = dma.done.wait (%p1322_p0), %s963_s5, 128  }
 0x464   : > { %1591 = vsyncadd (%p1322_p0), %s963_s5, 4294967168  ;;  %s21_s23 = sadd.s32 1, %s1614_s23   ;;  %s2076_s18 = smov %s1598_s19 }
 0x465   : > { %p18_p4 = scmp.ge.s32.totalorder %s21_s23, 5   ;;  %s2077_s19 = smov %s1602_s20 }
 0x466   : > { %s2078_s20 = smov %s1769_s29  ;;  %s2079_s21 = smov %s1610_s22 }
 0x467   : > { %s2080_s22 = smov %s2082_s11  ;;  %20 = sbr.rel (!%p18_p4) target bundleno = 9 (0x9), region = 118 }
 0x46c   :  { %968 = vsyncpa [#allocation5], 1 }
 0x46d   :  { %970 = vsyncpa [#allocation5 + $0x1], 1 }
 0x46e   :  { %971 = vsyncpa [#allocation10], 1 }
 0x46f   :  { %972 = vsyncpa [#allocation6], 1 }
 0x470   :  { %974 = vsyncpa [#allocation6 + $0x1], 1 }
 0x471   :  { %975 = vsyncpa [#allocation7], 1 }
 0x472   :  { %977 = vsyncpa [#allocation7 + $0x1], 1 }

</bundles_post_ra>
